<compile_context>
chip_gen: v7x
topology: tpu7x:2x2x1
jax: 0.10.0
libtpu: 0.0.40
codegen_flags: <defaults>
</compile_context>

<pallas_src>
import functools
import math

import jax
import jax.numpy as jnp
from jax.experimental import pallas as pl
from jax.experimental.pallas import tpu as pltpu

_LANE = 128
_SUBLANE = 8


def _round_up(n, m):
    return ((n + m - 1) // m) * m


def _mlp_kernel(x_ref, w1_ref, b1_ref, w2_ref, b2_ref, o_ref):
    # fc1: (TM, D) @ (D, H) + (1, H), f32 accumulate on the MXU.
    h = jnp.dot(x_ref[...], w1_ref[...],
                preferred_element_type=jnp.float32,
                precision=jax.lax.Precision.HIGHEST)
    h = jnp.maximum(h + b1_ref[...], 0.0)
    # fc2: (TM, H) @ (H, C_pad) + (1, C_pad) -> lane-dense (128-wide) store.
    out = jnp.dot(h, w2_ref[...],
                  preferred_element_type=jnp.float32,
                  precision=jax.lax.Precision.HIGHEST)
    o_ref[...] = (out + b2_ref[...]).astype(o_ref.dtype)


@functools.partial(jax.jit, static_argnames=("block_rows",))
def wine_model_forward(x, w1, b1, w2, b2, *, block_rows=512):
    """Fused fc1 -> ReLU -> fc2 forward pass in one Pallas kernel.

    x : (B, input_size)            float32
    w1: (input_size, hidden_size)  float32
    b1: (1, hidden_size)           float32
    w2: (hidden_size, num_classes) float32
    b2: (1, num_classes)           float32
    returns (B, num_classes) float32
    """
    B, D = x.shape
    H, C = w2.shape

    # Lane-dense output: pad the class dim up to a multiple of 128 (zeros),
    # slice it back off at the end.
    C_pad = _round_up(C, _LANE)
    w2p = jnp.pad(w2, ((0, 0), (0, C_pad - C)))
    b2p = jnp.pad(b2, ((0, 0), (0, C_pad - C)))

    # Batch tiling: stream TM rows per grid step; pad B up so the grid divides.
    tm = min(block_rows, _round_up(B, _SUBLANE))
    B_pad = _round_up(B, tm)
    xp = x if B_pad == B else jnp.pad(x, ((0, B_pad - B), (0, 0)))
    grid = (B_pad // tm,)

    out = pl.pallas_call(
        _mlp_kernel,
        out_shape=jax.ShapeDtypeStruct((B_pad, C_pad), jnp.float32),
        grid=grid,
        in_specs=[
            pl.BlockSpec((tm, D), lambda i: (i, 0)),      # x: streamed tiles
            pl.BlockSpec((D, H), lambda i: (0, 0)),        # w1: VMEM-resident
            pl.BlockSpec((1, H), lambda i: (0, 0)),        # b1: VMEM-resident
            pl.BlockSpec((H, C_pad), lambda i: (0, 0)),    # w2: VMEM-resident
            pl.BlockSpec((1, C_pad), lambda i: (0, 0)),    # b2: VMEM-resident
        ],
        out_specs=pl.BlockSpec((tm, C_pad), lambda i: (i, 0)),
        compiler_params=pltpu.CompilerParams(
            dimension_semantics=("parallel",),
        ),
    )(xp, w1, b1, w2p, b2p)

    return out[:B, :C]


def _reference(x, w1, b1, w2, b2):
    """Plain-JAX reference (same math as the PyTorch module)."""
    h = jnp.maximum(
        jnp.dot(x, w1, precision=jax.lax.Precision.HIGHEST) + b1, 0.0)
    return jnp.dot(h, w2, precision=jax.lax.Precision.HIGHEST) + b2


def init_linear_params(key, in_features, out_features):
    """Deterministic init matching nn.Linear's default U(-1/sqrt(fan_in), +)."""
    k_w, k_b = jax.random.split(key)
    bound = 1.0 / math.sqrt(in_features)
    # stored as (in, out): transpose of PyTorch's (out, in) weight
    w = jax.random.uniform(k_w, (in_features, out_features),
                           minval=-bound, maxval=bound, dtype=jnp.float32)
    b = jax.random.uniform(k_b, (1, out_features),
                           minval=-bound, maxval=bound, dtype=jnp.float32)
    return w, b


if __name__ == "__main__":
    # Wine-like sizes: 13 input features, 32 hidden, 3 classes.
    batch = 8
    input_size = 13
    hidden_size = 32
    num_classes = 3

    key = jax.random.PRNGKey(0)
    k_x, k_fc1, k_fc2, k_x2 = jax.random.split(key, 4)

    x = jax.random.normal(k_x, (batch, input_size), dtype=jnp.float32)
    w1, b1 = init_linear_params(k_fc1, input_size, hidden_size)
    w2, b2 = init_linear_params(k_fc2, hidden_size, num_classes)

    # Small-batch path (single grid step).
    out = wine_model_forward(x, w1, b1, w2, b2)
    jax.block_until_ready(out)
    ref = _reference(x, w1, b1, w2, b2)
    assert out.shape == (batch, num_classes)
    assert jnp.allclose(out, ref, atol=1e-5, rtol=1e-5)

    # Exercise the tiled multi-step grid path (non-multiple batch, grid=4).
    big_batch = 1000
    xb = jax.random.normal(k_x2, (big_batch, input_size), dtype=jnp.float32)
    outb = wine_model_forward(xb, w1, b1, w2, b2, block_rows=256)
    jax.block_until_ready(outb)
    refb = _reference(xb, w1, b1, w2, b2)
    assert outb.shape == (big_batch, num_classes)
    assert jnp.allclose(outb, refb, atol=1e-5, rtol=1e-5)

    print("KERNEL_OK")
</pallas_src>

<mosaic_0001>
module attributes {stable_mosaic.version = 11 : i64} {
  func.func @_mlp_kernel(%arg0: i32, %arg1: memref<8x13xf32, #tpu.memory_space<vmem>>, %arg2: memref<13x32xf32, #tpu.memory_space<vmem>>, %arg3: memref<1x32xf32, #tpu.memory_space<vmem>>, %arg4: memref<32x128xf32, #tpu.memory_space<vmem>>, %arg5: memref<1x128xf32, #tpu.memory_space<vmem>>, %arg6: memref<8x128xf32, #tpu.memory_space<vmem>>) attributes {dimension_semantics = [#tpu.dimension_semantics<parallel>], iteration_bounds = array<i64: 1>, scalar_prefetch = 0 : i64, scratch_operands = 0 : i64, tpu.core_type = #tpu.core_type<tc>, window_params = [{transform_indices = @transform_0, window_bounds = array<i64: 8, 13>}, {pipeline_mode = #tpu.pipeline_mode<synchronous>, transform_indices = @transform_1, window_bounds = array<i64: 13, 32>}, {pipeline_mode = #tpu.pipeline_mode<synchronous>, transform_indices = @transform_2, window_bounds = array<i64: 1, 32>}, {pipeline_mode = #tpu.pipeline_mode<synchronous>, transform_indices = @transform_3, window_bounds = array<i64: 32, 128>}, {pipeline_mode = #tpu.pipeline_mode<synchronous>, transform_indices = @transform_4, window_bounds = array<i64: 1, 128>}, {transform_indices = @transform_5, window_bounds = array<i64: 8, 128>}]} {
    %c0 = arith.constant 0 : index
    %c0_0 = arith.constant 0 : index
    %0 = vector.load %arg1[%c0, %c0_0] : memref<8x13xf32, #tpu.memory_space<vmem>>, vector<8x13xf32>
    %c0_1 = arith.constant 0 : index
    %c0_2 = arith.constant 0 : index
    %1 = vector.load %arg2[%c0_1, %c0_2] : memref<13x32xf32, #tpu.memory_space<vmem>>, vector<13x32xf32>
    %cst = arith.constant dense<0.000000e+00> : vector<8x32xf32>
    %2 = tpu.matmul %0, %1, %cst {dimension_numbers = #tpu.dot_dimension_numbers<[1], [0], [0], [1], [0, 0, 1, 1], [], []>, precision = #tpu.contract_precision<fp32>} : vector<8x13xf32>, vector<13x32xf32>, vector<8x32xf32> -> vector<8x32xf32>
    %c0_3 = arith.constant 0 : index
    %c0_4 = arith.constant 0 : index
    %3 = vector.load %arg3[%c0_3, %c0_4] : memref<1x32xf32, #tpu.memory_space<vmem>>, vector<1x32xf32>
    %4 = vector.broadcast %3 : vector<1x32xf32> to vector<8x32xf32>
    %5 = arith.addf %2, %4 : vector<8x32xf32>
    %cst_5 = arith.constant 0.000000e+00 : f32
    %6 = vector.broadcast %cst_5 : f32 to vector<8x32xf32>
    %7 = arith.maximumf %5, %6 : vector<8x32xf32>
    %c0_6 = arith.constant 0 : index
    %c0_7 = arith.constant 0 : index
    %8 = vector.load %arg4[%c0_6, %c0_7] : memref<32x128xf32, #tpu.memory_space<vmem>>, vector<32x128xf32>
    %cst_8 = arith.constant dense<0.000000e+00> : vector<8x128xf32>
    %9 = tpu.matmul %7, %8, %cst_8 {dimension_numbers = #tpu.dot_dimension_numbers<[1], [0], [0], [1], [0, 0, 1, 1], [], []>, precision = #tpu.contract_precision<fp32>} : vector<8x32xf32>, vector<32x128xf32>, vector<8x128xf32> -> vector<8x128xf32>
    %c0_9 = arith.constant 0 : index
    %c0_10 = arith.constant 0 : index
    %10 = vector.load %arg5[%c0_9, %c0_10] : memref<1x128xf32, #tpu.memory_space<vmem>>, vector<1x128xf32>
    %11 = vector.broadcast %10 : vector<1x128xf32> to vector<8x128xf32>
    %12 = arith.addf %9, %11 : vector<8x128xf32>
    %c0_11 = arith.constant 0 : index
    %c0_12 = arith.constant 0 : index
    %13 = vector.load %arg6[%c0_11, %c0_12] : memref<8x128xf32, #tpu.memory_space<vmem>>, vector<8x128xf32>
    tpu.vector_store %arg6[%c0_11, %c0_12], %12 {strides = array<i32>} : memref<8x128xf32, #tpu.memory_space<vmem>>, vector<8x128xf32>,
    return
  }
  func.func @transform_0(%arg0: i32) -> (i32, i32) {
    %c0_i32 = arith.constant 0 : i32
    %c0_i32_0 = arith.constant 0 : i32
    return %arg0, %c0_i32 : i32, i32
  }
  func.func @transform_1(%arg0: i32) -> (i32, i32) {
    %c0_i32 = arith.constant 0 : i32
    %c0_i32_0 = arith.constant 0 : i32
    %c0_i32_1 = arith.constant 0 : i32
    return %c0_i32, %c0_i32_0 : i32, i32
  }
  func.func @transform_2(%arg0: i32) -> (i32, i32) {
    %c0_i32 = arith.constant 0 : i32
    %c0_i32_0 = arith.constant 0 : i32
    %c0_i32_1 = arith.constant 0 : i32
    return %c0_i32, %c0_i32_0 : i32, i32
  }
  func.func @transform_3(%arg0: i32) -> (i32, i32) {
    %c0_i32 = arith.constant 0 : i32
    %c0_i32_0 = arith.constant 0 : i32
    %c0_i32_1 = arith.constant 0 : i32
    return %c0_i32, %c0_i32_0 : i32, i32
  }
  func.func @transform_4(%arg0: i32) -> (i32, i32) {
    %c0_i32 = arith.constant 0 : i32
    %c0_i32_0 = arith.constant 0 : i32
    %c0_i32_1 = arith.constant 0 : i32
    return %c0_i32, %c0_i32_0 : i32, i32
  }
  func.func @transform_5(%arg0: i32) -> (i32, i32) {
    %c0_i32 = arith.constant 0 : i32
    %c0_i32_0 = arith.constant 0 : i32
    return %arg0, %c0_i32 : i32, i32
  }
}

</mosaic_0001>

<bundles_post_ra>
// kernel: wine_model_forward.1
= control target key start
LH: loop header
LB: loop body
LE: loop exit
PB: predicated region body
PF: predicated region fallthrough
CT: control target
= control target key end

     0   :  { %vm34_vm0 = vcmask 1044480   ;;  %v1239_v0 = vmov 0.0|0.0   ;;  %vm1240_vm1 = vmmov 0   ;;  %v1241_v3 = vmov 0.0   ;;  %s1344_s1 = inlined_call_operand.vmem [shape: f32[13,32], index: 1, kind: input, shape index: {}]   ;;  %s1345_s0 = inlined_call_operand.vmem [shape: f32[8,13], index: 0, kind: input, shape index: {}]   ;;  %s1346_s3 = inlined_call_operand.vmem [shape: f32[32,128], index: 3, kind: input, shape index: {}]   ;;  %s1347_s2 = inlined_call_operand.vmem [shape: f32[1,32], index: 2, kind: input, shape index: {}]   ;;  %s1348_s4 = inlined_call_operand.vmem [shape: f32[1,128], index: 4, kind: input, shape index: {}]   ;;  %s1349_s5 = inlined_call_operand.vmem [shape: f32[8,128], index: 5, kind: output, shape index: {}]  }
   0x1   :  { %1161 = vmatprep.subr.bf16.mxu0 %v1239_v0  ;;  %v21_v1 = vld [vmem:[%s1344_s1] sm:$0xff]  ;;  %v22_v2 = vld [vmem:[%s1344_s1 + $0x8] sm:$0x1f]  ;;  %1057 = vmatprep.mubr.msk.f32.mxu0 %vm1240_vm1, %v1241_v3  ;;  %vm30_vm2 = vcmask 105472   ;;  %v500_v32 = vld [vmem:[%s1346_s3 + $0x10] sm:$0xff]  ;;  %vm509_vm3 = vcmask 261120  }
   0x2   :  { %v20_v4 = vld [vmem:[%s1345_s0] sm:$0xff]  ;;  %v36_v5 = vsel %vm34_vm0, %v22_v2, 0  ;;  %v39_v6 = vand.u32 4294901760, %v21_v1  ;;  %1185 = vmatprep.subr.bf16.mxu1 %v1239_v0  ;;  %1114 = vmatprep.mubr.msk.f32.mxu1 %vm1240_vm1, %v1241_v3  ;;  %v499_v27 = vld [vmem:[%s1346_s3 + $0x8] sm:$0xff]  ;;  %v501_v33 = vld [vmem:[%s1346_s3 + $0x18] sm:$0xff]  ;;  %v520_v36 = vand.u32 4294901760, %v500_v32 }
   0x3   :  { %v32_v7 = vsel %vm30_vm2, %v20_v4, 0  ;;  %v42_v8 = vand.u32 4294901760, %v36_v5  ;;  %v498_v26 = vld [vmem:[%s1346_s3] sm:$0xff]  ;;  %v517_v29 = vand.u32 4294901760, %v499_v27  ;;  %v523_v37 = vand.u32 4294901760, %v501_v33 }
   0x4   :  { %v105_v9 = vand.u32 4294901760, %v32_v7  ;;  %v117_v10 = vsub.f32 %v21_v1, %v39_v6  ;;  %v514_v28 = vand.u32 4294901760, %v498_v26  ;;  %v608_v40 = vsub.f32 %v500_v32, %v520_v36  ;;  %v1003_v58 = vld [vmem:[%s1347_s2] ss:$0 sm:$0xff] }
   0x5   :  { %v1162_v11 = vpack.c.bf16 %v42_v8, %v39_v6  ;;  %v124_v12 = vsub.f32 %v36_v5, %v42_v8  ;;  %v601_v31 = vsub.f32 %v499_v27, %v517_v29  ;;  %v615_v41 = vsub.f32 %v501_v33, %v523_v37 }
   0x6   :  { %v106_v13 = vsub.f32 %v32_v7, %v105_v9  ;;  %v118_v14 = vand.u32 4294901760, %v117_v10  ;;  %v594_v30 = vsub.f32 %v498_v26, %v514_v28  ;;  %v609_v44 = vand.u32 4294901760, %v608_v40 }
   0x7   :  { %1163 = vmatpush3.bf16.msra.mxu0 %v1162_v11  ;;  %v125_v16 = vand.u32 4294901760, %v124_v12  ;;  %v1168_v24 = vpack.c.bf16 %v124_v12, %v117_v10  ;;  %v602_v35 = vand.u32 4294901760, %v601_v31  ;;  %v616_v45 = vand.u32 4294901760, %v615_v41 }
   0x8   :  { %v107_v15 = vand.u32 4294901760, %v106_v13  ;;  %1164 = vmatprep.subr.bf16.mxu0 %v1239_v0  ;;  %v119_v17 = vsub.f32 %v117_v10, %v118_v14  ;;  %v595_v34 = vand.u32 4294901760, %v594_v30  ;;  %v610_v47 = vsub.f32 %v608_v40, %v609_v44 }
   0x9   :  { %v126_v19 = vsub.f32 %v124_v12, %v125_v16  ;;  %v1174_v25 = vpack.c.bf16 %v125_v16, %v118_v14  ;;  %v603_v39 = vsub.f32 %v601_v31, %v602_v35  ;;  %v617_v48 = vsub.f32 %v615_v41, %v616_v45 }
   0xa   :  { %v108_v18 = vsub.f32 %v106_v13, %v107_v15  ;;  %v120_v20 = vand.u32 4294901760, %v119_v17  ;;  %v596_v38 = vsub.f32 %v594_v30, %v595_v34  ;;  %v611_v49 = vand.u32 4294901760, %v610_v47 }
   0xb   :  { %v127_v22 = vand.u32 4294901760, %v126_v19  ;;  %v604_v43 = vand.u32 4294901760, %v603_v39  ;;  %v618_v50 = vand.u32 4294901760, %v617_v48  ;;  %v1180_v52 = vpack.c.bf16 %v517_v29, %v514_v28 }
   0xc   :  { %v109_v21 = vand.u32 4294901760, %v108_v18  ;;  %v597_v42 = vand.u32 4294901760, %v596_v38  ;;  %v1192_v53 = vpack.c.bf16 %v601_v31, %v594_v30  ;;  %v1183_v54 = vpack.c.bf16 %v523_v37, %v520_v36 }
   0xd   :  { %v1165_v23 = vpack.c.bf16 %v127_v22, %v120_v20  ;;  %v1189_v51 = vpack.c.bf16 %v618_v50, %v611_v49  ;;  %v1195_v55 = vpack.c.bf16 %v615_v41, %v608_v40  ;;  %v1204_v56 = vpack.c.bf16 %v602_v35, %v595_v34 }
   0xe   :  { %1058 = vmatmul.mubr.f32.vlgmr.msra.gmra.mrb[0].mxu0 %v109_v21  ;;  %v1186_v46 = vpack.c.bf16 %v604_v43, %v597_v42  ;;  %v1207_v57 = vpack.c.bf16 %v616_v45, %v609_v44 }
   0xf   :  { %1064 = vmatprep.mubr.msk.f32.mxu0 %vm1240_vm1, %v1241_v3  ;;  %1166 = vmatpush3.bf16.msra.mxu0 %v1165_v23 }
  0x10   :  { %1167 = vmatprep.subr.bf16.mxu0 %v1239_v0  ;;  %1187 = vmatpush3.bf16.msra.mxu1 %v1186_v46 }
  0x11   :  { %1188 = vmatprep.subr.bf16.mxu1 %v1239_v0 }
  0x14   :  { %1190 = vmatpush3.bf16.msra.mxu1 %v1189_v51 }
  0x15   :  { %1191 = vmatprep.subr.bf16.mxu1 %v1239_v0 }
  0x16   :  { %1065 = vmatmul.mubr.f32.vlgmr.msra.gmra.mrb[0].mxu0 %v105_v9 }
  0x17   :  { %1169 = vmatpush3.bf16.msra.mxu0 %v1168_v24  ;;  %1071 = vmatprep.mubr.msk.f32.mxu0 %vm1240_vm1, %v1241_v3 }
  0x18   :  { %1170 = vmatprep.subr.bf16.mxu0 %v1239_v0 }
  0x1e   :  { %1072 = vmatmul.mubr.f32.vlgmr.msra.gmra.mrb[0].mxu0 %v106_v13 }
  0x1f   :  { %1172 = vmatpush3.bf16.msra.mxu0 %v1162_v11  ;;  %1078 = vmatprep.mubr.msk.f32.mxu0 %vm1240_vm1, %v1241_v3 }
  0x20   :  { %1173 = vmatprep.subr.bf16.mxu0 %v1239_v0 }
  0x26   :  { %1079 = vmatmul.mubr.f32.vlgmr.msra.gmra.mrb[0].mxu0 %v107_v15 }
  0x27   :  { %1175 = vmatpush3.bf16.msra.mxu0 %v1174_v25  ;;  %1085 = vmatprep.mubr.msk.f32.mxu0 %vm1240_vm1, %v1241_v3 }
  0x28   :  { %1176 = vmatprep.subr.bf16.mxu0 %v1239_v0 }
  0x2e   :  { %1086 = vmatmul.mubr.f32.vlgmr.msra.gmra.mrb[0].mxu0 %v105_v9 }
  0x2f   :  { %1178 = vmatpush3.bf16.msra.mxu0 %v1162_v11  ;;  %1092 = vmatprep.mubr.msk.f32.mxu0 %vm1240_vm1, %v1241_v3 }
  0x30   :  { %1179 = vmatprep.subr.bf16.mxu0 %v1239_v0 }
  0x36   :  { %1093 = vmatmul.mubr.f32.vlgmr.msra.gmra.mrb[0].mxu0 %v105_v9  ;;  %v1004_v9 = vld [vmem:[%s1348_s4] ss:$0 sm:$0xff] }
  0x37   :  { %1103 = vmatprep.mubr.msk.f32.mxu0 %vm1240_vm1, %v1241_v3  ;;  %1181 = vmatpush3.bf16.msra.mxu0 %v1180_v52 }
  0x38   :  { %1182 = vmatprep.subr.bf16.mxu0 %v1239_v0 }
  0x3b   :  { %1184 = vmatpush3.bf16.msra.mxu0 %v1183_v54 }
 0x109   :  { %v493_v59 = vpop.f32.mrb[0].mxu0 }
 0x10a   :  { %v1215_v60 = vadd.f32 %v1003_v58, %v493_v59  ;;  %v1094_v61 = vpop.f32.mrb[1].mxu0 }
 0x10c   :  { %v497_v62 = vmax.f32 %v1215_v60, 0.0 }
 0x10e   :  { %v511_v63 = vsel %vm509_vm3, %v497_v62, 0 }
 0x10f   :  { %v582_v1 = vand.u32 4294901760, %v511_v63 }
 0x111   :  { %v583_v2 = vsub.f32 %v511_v63, %v582_v1  ;;  %1115 = vmatmul.mubr.f32.vlgmr.msra.gmra.mrb[0].mxu1 %v582_v1 }
 0x112   :  { %1193 = vmatpush3.bf16.msra.mxu1 %v1192_v53  ;;  %1125 = vmatprep.mubr.msk.f32.mxu1 %vm1240_vm1, %v1241_v3 }
 0x113   :  { %v584_v4 = vand.u32 4294901760, %v583_v2  ;;  %1194 = vmatprep.subr.bf16.mxu1 %v1239_v0 }
 0x115   :  { %v585_v5 = vsub.f32 %v583_v2, %v584_v4 }
 0x116   :  { %1196 = vmatpush3.bf16.msra.mxu1 %v1195_v55 }
 0x117   :  { %v586_v6 = vand.u32 4294901760, %v585_v5  ;;  %1197 = vmatprep.subr.bf16.mxu1 %v1239_v0 }
 0x119   :  { %1104 = vmatmul.mubr.f32.vlgmr.msra.gmra.mrb[2].mxu0 %v586_v6  ;;  %1126 = vmatmul.mubr.f32.vlgmr.msra.gmra.mrb[0].mxu1 %v583_v2 }
 0x11a   :  { %1199 = vmatpush3.bf16.msra.mxu1 %v1180_v52  ;;  %1136 = vmatprep.mubr.msk.f32.mxu1 %vm1240_vm1, %v1241_v3 }
 0x11b   :  { %1200 = vmatprep.subr.bf16.mxu1 %v1239_v0 }
 0x11e   :  { %1202 = vmatpush3.bf16.msra.mxu1 %v1183_v54 }
 0x11f   :  { %1203 = vmatprep.subr.bf16.mxu1 %v1239_v0 }
 0x121   :  { %1137 = vmatmul.mubr.f32.vlgmr.msra.gmra.mrb[0].mxu1 %v584_v4 }
 0x122   :  { %1205 = vmatpush3.bf16.msra.mxu1 %v1204_v56  ;;  %1147 = vmatprep.mubr.msk.f32.mxu1 %vm1240_vm1, %v1241_v3 }
 0x123   :  { %1206 = vmatprep.subr.bf16.mxu1 %v1239_v0 }
 0x126   :  { %1208 = vmatpush3.bf16.msra.mxu1 %v1207_v57 }
 0x127   :  { %1209 = vmatprep.subr.bf16.mxu1 %v1239_v0 }
 0x129   :  { %1148 = vmatmul.mubr.f32.vlgmr.msra.gmra.mrb[0].mxu1 %v582_v1 }
 0x12a   :  { %1211 = vmatpush3.bf16.msra.mxu1 %v1180_v52  ;;  %1158 = vmatprep.mubr.msk.f32.mxu1 %vm1240_vm1, %v1241_v3 }
 0x12b   :  { %1212 = vmatprep.subr.bf16.mxu1 %v1239_v0 }
 0x12e   :  { %1214 = vmatpush3.bf16.msra.mxu1 %v1183_v54 }
 0x131   :  { %1159 = vmatmul.mubr.f32.vlgmr.msra.gmra.mrb[0].mxu1 %v582_v1 }
 0x1ec   :  { %v588_v7 = vpop.f32.mrb[2].mxu0 }
 0x1ed   :  { %v1105_v8 = vpop.f32.mrb[3].mxu0  ;;  %v589_v10 = vadd.f32 %v1004_v9, %v588_v7 }
 0x204   :  { %v994_v11 = vpop.f32.mrb[0].mxu1 }
 0x205   :  { %v1217_v12 = vadd.f32 %v994_v11, %v589_v10  ;;  %v1160_v13 = vpop.f32.mrb[1].mxu1 }
 0x207   :  { %998 = vst [vmem:[%s1349_s5] sm:$0xff] %v1217_v12 }

</bundles_post_ra>
